<compile_context>
chip_gen: v7x
topology: tpu7x:2x2x1
jax: 0.10.0
libtpu: 0.0.40
codegen_flags: <defaults>
</compile_context>

<pallas_src>
import functools

import jax
import jax.numpy as jnp
from jax.experimental import pallas as pl
from jax.experimental.pallas import tpu as pltpu


def _round_up(x, m):
    return ((x + m - 1) // m) * m


def _silu_f32(a):
    # SiLU in f32; approx reciprocal runs on the EUP slot (idle after the exp).
    return a * pl.reciprocal(1.0 + jnp.exp(-a), approx=True)


def _c1_fused_kernel(xp_ref, mask_ref, w1_ref, b1_ref, w3_ref, b3_ref, o_ref,
                     *scratch, n_layers, wp, lc, guard, cmid, stacked):
    """Fused C1 forward for one batch element.

    xp_ref  : (1, Cin, Lc)    zero-padded flattened input slab (compute dtype)
    mask_ref: (1, Lc) f32     1.0 at valid interior pixels, 0.0 at padding/tail
    w1_ref  : (C2, Cin)       folded 1x1 conv weight
    b1_ref  : (C2, 1) f32     folded 1x1 conv bias
    w3_ref  : (n, C2, 9*C2)   folded 3x3 conv weights, taps flattened into K
    b3_ref  : (n, C2, 1) f32  folded 3x3 conv biases
    o_ref   : (1, C2, Lc)     output slab (padded layout; wrapper de-pads once)
    scratch : [ybuf] (+[zbuf]) (C2, guard + Lc + guard) VMEM, compute dtype
    """
    f32 = jnp.float32
    mask = jnp.broadcast_to(mask_ref[...] > 0.0, (cmid, lc))

    # ---- cv1: 1x1 conv + folded-BN bias + SiLU; pads forced back to zero ----
    acc = jnp.dot(w1_ref[...], xp_ref[0], preferred_element_type=f32)
    acc = _silu_f32(acc + b1_ref[...])
    y = jnp.where(mask, acc, 0.0)                       # (C2, Lc) f32

    if n_layers == 0:                                   # m == identity -> y + y
        o_ref[0] = (y + y).astype(o_ref.dtype)
        return

    ybuf = scratch[0]
    cdt = ybuf.dtype
    zeros_g = jnp.zeros((cmid, guard), cdt)
    ybuf[:, :guard] = zeros_g                           # front guard (aligned)
    ybuf[:, guard + lc:] = zeros_g                      # back guard (aligned)
    ybuf[:, guard:guard + lc] = y.astype(cdt)

    zbuf = None
    if n_layers >= 2:
        zbuf = scratch[1]
        zbuf[:, :guard] = zeros_g
        zbuf[:, guard + lc:] = zeros_g

    src = ybuf
    for j in range(n_layers):
        wj = w3_ref[j]                                  # (C2, 9*C2)
        if stacked:
            # One MXU matmul with contraction 9*C2: concatenate the 9 shifted
            # tap slices along sublanes.
            taps = [src[:, guard + (kh - 1) * wp + (kw - 1):
                           guard + (kh - 1) * wp + (kw - 1) + lc]
                    for kh in range(3) for kw in range(3)]
            acc = jnp.dot(wj, jnp.concatenate(taps, axis=0),
                          preferred_element_type=f32)
        else:
            # C2 >= 128: each tap already fills the MXU contraction depth.
            acc = jnp.zeros((cmid, lc), f32)
            for kh in range(3):
                for kw in range(3):
                    t = kh * 3 + kw
                    off = guard + (kh - 1) * wp + (kw - 1)
                    acc = acc + jnp.dot(wj[:, t * cmid:(t + 1) * cmid],
                                        src[:, off:off + lc],
                                        preferred_element_type=f32)
        acc = _silu_f32(acc + b3_ref[j])
        z = jnp.where(mask, acc, 0.0)

        if j == n_layers - 1:
            res = ybuf[:, guard:guard + lc].astype(f32)
            o_ref[0] = (z + res).astype(o_ref.dtype)    # fused residual add
        else:
            zbuf[:, guard:guard + lc] = z.astype(cdt)
            src = zbuf


def _fold_bn(w, gamma, beta, mean, var, eps):
    scale = gamma / jnp.sqrt(var + eps)
    w_f = w * scale[:, None, None, None]
    b_f = beta - mean * scale
    return w_f, b_f


def c1_forward(x, cv1, m, *, eps=1e-3, compute_dtype=jnp.bfloat16):
    """Pallas forward of C1: y = SiLU(BN(Conv1x1(x))); return m(y) + y."""
    B, cin, H, W = x.shape
    n = len(m)
    w1, b1 = _fold_bn(cv1["w"], cv1["gamma"], cv1["beta"],
                      cv1["mean"], cv1["var"], eps)
    c2 = w1.shape[0]

    Hp, Wp = H + 2, W + 2
    lc = _round_up(Hp * Wp, 128)        # lane-dense slab width (mult of 128)
    guard = _round_up(Wp + 1, 128)      # zero guard so tap slices stay in-bounds

    # One pad of the (small) input into padded-slab layout; cast operands once.
    xp = jnp.pad(x, ((0, 0), (0, 0), (1, 1), (1, 1))).reshape(B, cin, Hp * Wp)
    xp = jnp.pad(xp, ((0, 0), (0, 0), (0, lc - Hp * Wp))).astype(compute_dtype)

    # Validity mask of the padded slab (1 at interior pixels, 0 elsewhere).
    p = jnp.arange(lc)
    row, col = p // Wp, p % Wp
    mask = ((row >= 1) & (row <= H) & (col >= 1) & (col <= W))
    mask = mask.astype(jnp.float32).reshape(1, lc)

    w1m = w1[:, :, 0, 0].astype(compute_dtype)
    b1m = b1.reshape(c2, 1).astype(jnp.float32)

    w3_list, b3_list = [], []
    for prm in m:
        wz, bz = _fold_bn(prm["w"], prm["gamma"], prm["beta"],
                          prm["mean"], prm["var"], eps)
        # (C2, C2, 3, 3) -> (C2, 9*C2) with K index = (kh*3 + kw)*C2 + cin.
        w3_list.append(jnp.transpose(wz, (0, 2, 3, 1)).reshape(c2, 9 * c2))
        b3_list.append(bz.reshape(c2, 1))
    if n:
        w3 = jnp.stack(w3_list).astype(compute_dtype)       # (n, C2, 9*C2)
        b3 = jnp.stack(b3_list).astype(jnp.float32)         # (n, C2, 1)
    else:  # dummies; never read when n == 0
        w3 = jnp.zeros((1, c2, 9 * c2), compute_dtype)
        b3 = jnp.zeros((1, c2, 1), jnp.float32)
    n_eff = max(n, 1)

    stacked = c2 < 128
    scratch_shapes = []
    if n >= 1:
        scratch_shapes.append(pltpu.VMEM((c2, guard + lc + guard), compute_dtype))
    if n >= 2:
        scratch_shapes.append(pltpu.VMEM((c2, guard + lc + guard), compute_dtype))

    # VMEM budget: double-buffered in/out blocks + scratch + f32 temporaries.
    cb = jnp.dtype(compute_dtype).itemsize
    ob = x.dtype.itemsize
    block_in = ((cin * lc + c2 * cin + n_eff * c2 * 9 * c2) * cb
                + lc * 4 + (n_eff + 1) * c2 * 4)
    block_out = c2 * lc * ob
    temps = 2 * c2 * lc * 4 + (9 * c2 * lc * cb if (stacked and n) else 0)
    need = (2 * (block_in + block_out)
            + len(scratch_shapes) * c2 * (2 * guard + lc) * cb + temps)
    vmem_limit = int(min(max(need + (4 << 20), 16 << 20), 64 << 20))

    kernel = functools.partial(
        _c1_fused_kernel, n_layers=n, wp=Wp, lc=lc, guard=guard, cmid=c2,
        stacked=stacked)

    out_slab = pl.pallas_call(
        kernel,
        out_shape=jax.ShapeDtypeStruct((B, c2, lc), x.dtype),
        grid_spec=pltpu.PrefetchScalarGridSpec(
            num_scalar_prefetch=0,
            grid=(B,),
            in_specs=[
                pl.BlockSpec((1, cin, lc), lambda i: (i, 0, 0)),
                pl.BlockSpec((1, lc), lambda i: (0, 0)),
                pl.BlockSpec((c2, cin), lambda i: (0, 0)),
                pl.BlockSpec((c2, 1), lambda i: (0, 0)),
                pl.BlockSpec((n_eff, c2, 9 * c2), lambda i: (0, 0, 0)),
                pl.BlockSpec((n_eff, c2, 1), lambda i: (0, 0, 0)),
            ],
            out_specs=pl.BlockSpec((1, c2, lc), lambda i: (i, 0, 0)),
            scratch_shapes=scratch_shapes),
        compiler_params=pltpu.CompilerParams(
            dimension_semantics=("parallel",),
            vmem_limit_bytes=vmem_limit),
    )(xp, mask, w1m, b1m, w3, b3)

    # Single de-pad of the final output slab.
    out = out_slab[:, :, :Hp * Wp].reshape(B, c2, Hp, Wp)[:, :, 1:H + 1, 1:W + 1]
    return out


def c1_reference(x, cv1, m, *, eps=1e-3):
    """Plain-JAX reference mirroring the PyTorch forward (eval-mode BN)."""
    def conv_bn_silu(h, p, pad):
        h = jax.lax.conv_general_dilated(
            h, p["w"], window_strides=(1, 1), padding=pad,
            dimension_numbers=("NCHW", "OIHW", "NCHW"),
            precision=jax.lax.Precision.HIGHEST)
        s = p["gamma"] / jnp.sqrt(p["var"] + eps)
        h = (h * s[None, :, None, None]
             + (p["beta"] - p["mean"] * s)[None, :, None, None])
        return h * jax.nn.sigmoid(h)

    y = conv_bn_silu(x, cv1, [(0, 0), (0, 0)])
    z = y
    for p in m:
        z = conv_bn_silu(z, p, [(1, 1), (1, 1)])
    return z + y


if __name__ == "__main__":
    B, c1, c2, H, W, n = 2, 8, 16, 16, 16, 1
    key = jax.random.PRNGKey(0)
    ks = jax.random.split(key, 2 + n)

    x = jax.random.normal(ks[0], (B, c1, H, W), dtype=jnp.float32)

    def make_conv_bn(k, cin, cout, ksize):
        kw, kg, kb, km, kv = jax.random.split(k, 5)
        fan_in = float(cin * ksize * ksize)
        return dict(
            w=jax.random.normal(kw, (cout, cin, ksize, ksize), jnp.float32)
              / jnp.sqrt(fan_in),
            gamma=1.0 + 0.1 * jax.random.normal(kg, (cout,), jnp.float32),
            beta=0.1 * jax.random.normal(kb, (cout,), jnp.float32),
            mean=0.1 * jax.random.normal(km, (cout,), jnp.float32),
            var=0.5 + jax.random.uniform(kv, (cout,), jnp.float32),
        )

    cv1 = make_conv_bn(ks[1], c1, c2, 1)
    m = [make_conv_bn(ks[2 + i], c2, c2, 3) for i in range(n)]

    out = c1_forward(x, cv1, m, eps=1e-3)
    out = jax.block_until_ready(out)

    ref = c1_reference(x, cv1, m, eps=1e-3)
    assert out.shape == ref.shape, (out.shape, ref.shape)
    max_err = float(jnp.max(jnp.abs(out - ref)))
    # bf16 matmul operands (f32 accumulation) -> slightly relaxed tolerance.
    assert jnp.allclose(out, ref, atol=3e-2, rtol=3e-2), f"mismatch, max_err={max_err}"

    print("KERNEL_OK")
</pallas_src>

<mosaic_0001>
module attributes {stable_mosaic.version = 11 : i64} {
  func.func @_c1_fused_kernel(%arg0: i32, %arg1: memref<1x8x384xbf16, #tpu.memory_space<vmem>>, %arg2: memref<1x384xf32, #tpu.memory_space<vmem>>, %arg3: memref<16x8xbf16, #tpu.memory_space<vmem>>, %arg4: memref<16x1xf32, #tpu.memory_space<vmem>>, %arg5: memref<1x16x144xbf16, #tpu.memory_space<vmem>>, %arg6: memref<1x16x1xf32, #tpu.memory_space<vmem>>, %arg7: memref<1x16x384xf32, #tpu.memory_space<vmem>>, %arg8: memref<16x640xbf16, #tpu.memory_space<vmem>>) attributes {dimension_semantics = [#tpu.dimension_semantics<parallel>], iteration_bounds = array<i64: 2>, scalar_prefetch = 0 : i64, scratch_operands = 1 : i64, tpu.core_type = #tpu.core_type<tc>, window_params = [{transform_indices = @transform_0, window_bounds = array<i64: 1, 8, 384>}, {pipeline_mode = #tpu.pipeline_mode<synchronous>, transform_indices = @transform_1, window_bounds = array<i64: 1, 384>}, {pipeline_mode = #tpu.pipeline_mode<synchronous>, transform_indices = @transform_2, window_bounds = array<i64: 16, 8>}, {pipeline_mode = #tpu.pipeline_mode<synchronous>, transform_indices = @transform_3, window_bounds = array<i64: 16, 1>}, {pipeline_mode = #tpu.pipeline_mode<synchronous>, transform_indices = @transform_4, window_bounds = array<i64: 1, 16, 144>}, {pipeline_mode = #tpu.pipeline_mode<synchronous>, transform_indices = @transform_5, window_bounds = array<i64: 1, 16, 1>}, {transform_indices = @transform_6, window_bounds = array<i64: 1, 16, 384>}]} {
    %c0 = arith.constant 0 : index
    %c0_0 = arith.constant 0 : index
    %0 = vector.load %arg2[%c0, %c0_0] : memref<1x384xf32, #tpu.memory_space<vmem>>, vector<1x384xf32>
    %cst = arith.constant 0.000000e+00 : f32
    %1 = vector.broadcast %cst : f32 to vector<1x384xf32>
    %2 = arith.cmpf ogt, %0, %1 : vector<1x384xf32>
    %3 = vector.shape_cast %2 : vector<1x384xi1> to vector<1x384xi1>
    %4 = vector.broadcast %3 : vector<1x384xi1> to vector<16x384xi1>
    %c0_1 = arith.constant 0 : index
    %c0_2 = arith.constant 0 : index
    %5 = vector.load %arg3[%c0_1, %c0_2] : memref<16x8xbf16, #tpu.memory_space<vmem>>, vector<16x8xbf16>
    %c0_3 = arith.constant 0 : index
    %c0_4 = arith.constant 0 : index
    %c0_5 = arith.constant 0 : index
    %6 = vector.load %arg1[%c0_3, %c0_4, %c0_5] : memref<1x8x384xbf16, #tpu.memory_space<vmem>>, vector<1x8x384xbf16>
    %7 = vector.shape_cast %6 : vector<1x8x384xbf16> to vector<8x384xbf16>
    %cst_6 = arith.constant dense<0.000000e+00> : vector<16x384xf32>
    %8 = tpu.matmul %5, %7, %cst_6 {dimension_numbers = #tpu.dot_dimension_numbers<[1], [0], [0], [1], [0, 0, 1, 1], [], []>} : vector<16x8xbf16>, vector<8x384xbf16>, vector<16x384xf32> -> vector<16x384xf32>
    %c0_7 = arith.constant 0 : index
    %c0_8 = arith.constant 0 : index
    %9 = vector.load %arg4[%c0_7, %c0_8] : memref<16x1xf32, #tpu.memory_space<vmem>>, vector<16x1xf32>
    %10 = vector.broadcast %9 : vector<16x1xf32> to vector<16x384xf32>
    %11 = arith.addf %8, %10 : vector<16x384xf32>
    %cst_9 = arith.constant 0.000000e+00 : f32
    %12 = vector.broadcast %cst_9 : f32 to vector<16x384xf32>
    %13 = arith.subf %12, %11 : vector<16x384xf32>
    %14 = math.exp %13 : vector<16x384xf32>
    %cst_10 = arith.constant 1.000000e+00 : f32
    %15 = vector.broadcast %cst_10 : f32 to vector<16x384xf32>
    %16 = arith.addf %15, %14 : vector<16x384xf32>
    %17 = tpu.reciprocal %16 {approx = true} : vector<16x384xf32> -> vector<16x384xf32>
    %18 = arith.mulf %11, %17 : vector<16x384xf32>
    %cst_11 = arith.constant 0.000000e+00 : f32
    %19 = vector.broadcast %cst_11 : f32 to vector<16x384xf32>
    %20 = arith.select %4, %18, %19 : vector<16x384xi1>, vector<16x384xf32>
    %cst_12 = arith.constant 0.000000e+00 : bf16
    %21 = vector.broadcast %cst_12 : bf16 to vector<16x128xbf16>
    %c0_13 = arith.constant 0 : index
    %c0_14 = arith.constant 0 : index
    %22 = vector.load %arg8[%c0_13, %c0_14] : memref<16x640xbf16, #tpu.memory_space<vmem>>, vector<16x128xbf16>
    tpu.vector_store %arg8[%c0_13, %c0_14], %21 {strides = array<i32>} : memref<16x640xbf16, #tpu.memory_space<vmem>>, vector<16x128xbf16>,
    %c0_15 = arith.constant 0 : index
    %c512 = arith.constant 512 : index
    %23 = vector.load %arg8[%c0_15, %c512] : memref<16x640xbf16, #tpu.memory_space<vmem>>, vector<16x128xbf16>
    tpu.vector_store %arg8[%c0_15, %c512], %21 {strides = array<i32>} : memref<16x640xbf16, #tpu.memory_space<vmem>>, vector<16x128xbf16>,
    %24 = arith.truncf %20 : vector<16x384xf32> to vector<16x384xbf16>
    %c0_16 = arith.constant 0 : index
    %c128 = arith.constant 128 : index
    %25 = vector.load %arg8[%c0_16, %c128] : memref<16x640xbf16, #tpu.memory_space<vmem>>, vector<16x384xbf16>
    tpu.vector_store %arg8[%c0_16, %c128], %24 {strides = array<i32>} : memref<16x640xbf16, #tpu.memory_space<vmem>>, vector<16x384xbf16>,
    %c0_17 = arith.constant 0 : index
    %c0_18 = arith.constant 0 : index
    %c0_19 = arith.constant 0 : index
    %26 = vector.load %arg5[%c0_17, %c0_18, %c0_19] : memref<1x16x144xbf16, #tpu.memory_space<vmem>>, vector<1x16x144xbf16>
    %27 = vector.shape_cast %26 : vector<1x16x144xbf16> to vector<16x144xbf16>
    %c0_20 = arith.constant 0 : index
    %c109 = arith.constant 109 : index
    %28 = vector.load %arg8[%c0_20, %c109] : memref<16x640xbf16, #tpu.memory_space<vmem>>, vector<16x384xbf16>
    %c0_21 = arith.constant 0 : index
    %c110 = arith.constant 110 : index
    %29 = vector.load %arg8[%c0_21, %c110] : memref<16x640xbf16, #tpu.memory_space<vmem>>, vector<16x384xbf16>
    %c0_22 = arith.constant 0 : index
    %c111 = arith.constant 111 : index
    %30 = vector.load %arg8[%c0_22, %c111] : memref<16x640xbf16, #tpu.memory_space<vmem>>, vector<16x384xbf16>
    %c0_23 = arith.constant 0 : index
    %c127 = arith.constant 127 : index
    %31 = vector.load %arg8[%c0_23, %c127] : memref<16x640xbf16, #tpu.memory_space<vmem>>, vector<16x384xbf16>
    %c0_24 = arith.constant 0 : index
    %c128_25 = arith.constant 128 : index
    %32 = vector.load %arg8[%c0_24, %c128_25] : memref<16x640xbf16, #tpu.memory_space<vmem>>, vector<16x384xbf16>
    %c0_26 = arith.constant 0 : index
    %c129 = arith.constant 129 : index
    %33 = vector.load %arg8[%c0_26, %c129] : memref<16x640xbf16, #tpu.memory_space<vmem>>, vector<16x384xbf16>
    %c0_27 = arith.constant 0 : index
    %c145 = arith.constant 145 : index
    %34 = vector.load %arg8[%c0_27, %c145] : memref<16x640xbf16, #tpu.memory_space<vmem>>, vector<16x384xbf16>
    %c0_28 = arith.constant 0 : index
    %c146 = arith.constant 146 : index
    %35 = vector.load %arg8[%c0_28, %c146] : memref<16x640xbf16, #tpu.memory_space<vmem>>, vector<16x384xbf16>
    %c0_29 = arith.constant 0 : index
    %c147 = arith.constant 147 : index
    %36 = vector.load %arg8[%c0_29, %c147] : memref<16x640xbf16, #tpu.memory_space<vmem>>, vector<16x384xbf16>
    %37 = tpu.concatenate %28, %29, %30, %31, %32, %33, %34, %35, %36 in 0 : vector<16x384xbf16>, vector<16x384xbf16>, vector<16x384xbf16>, vector<16x384xbf16>, vector<16x384xbf16>, vector<16x384xbf16>, vector<16x384xbf16>, vector<16x384xbf16>, vector<16x384xbf16> -> vector<144x384xbf16>
    %cst_30 = arith.constant dense<0.000000e+00> : vector<16x384xf32>
    %38 = tpu.matmul %27, %37, %cst_30 {dimension_numbers = #tpu.dot_dimension_numbers<[1], [0], [0], [1], [0, 0, 1, 1], [], []>} : vector<16x144xbf16>, vector<144x384xbf16>, vector<16x384xf32> -> vector<16x384xf32>
    %c0_31 = arith.constant 0 : index
    %c0_32 = arith.constant 0 : index
    %c0_33 = arith.constant 0 : index
    %39 = vector.load %arg6[%c0_31, %c0_32, %c0_33] : memref<1x16x1xf32, #tpu.memory_space<vmem>>, vector<1x16x1xf32>
    %40 = vector.shape_cast %39 : vector<1x16x1xf32> to vector<16x1xf32>
    %41 = vector.broadcast %40 : vector<16x1xf32> to vector<16x384xf32>
    %42 = arith.addf %38, %41 : vector<16x384xf32>
    %cst_34 = arith.constant 0.000000e+00 : f32
    %43 = vector.broadcast %cst_34 : f32 to vector<16x384xf32>
    %44 = arith.subf %43, %42 : vector<16x384xf32>
    %45 = math.exp %44 : vector<16x384xf32>
    %cst_35 = arith.constant 1.000000e+00 : f32
    %46 = vector.broadcast %cst_35 : f32 to vector<16x384xf32>
    %47 = arith.addf %46, %45 : vector<16x384xf32>
    %48 = tpu.reciprocal %47 {approx = true} : vector<16x384xf32> -> vector<16x384xf32>
    %49 = arith.mulf %42, %48 : vector<16x384xf32>
    %cst_36 = arith.constant 0.000000e+00 : f32
    %50 = vector.broadcast %cst_36 : f32 to vector<16x384xf32>
    %51 = arith.select %4, %49, %50 : vector<16x384xi1>, vector<16x384xf32>
    %c0_37 = arith.constant 0 : index
    %c128_38 = arith.constant 128 : index
    %52 = vector.load %arg8[%c0_37, %c128_38] : memref<16x640xbf16, #tpu.memory_space<vmem>>, vector<16x384xbf16>
    %53 = arith.extf %52 : vector<16x384xbf16> to vector<16x384xf32>
    %54 = arith.addf %51, %53 : vector<16x384xf32>
    %c0_39 = arith.constant 0 : index
    %c0_40 = arith.constant 0 : index
    %c0_41 = arith.constant 0 : index
    %55 = vector.load %arg7[%c0_39, %c0_40, %c0_41] : memref<1x16x384xf32, #tpu.memory_space<vmem>>, vector<1x16x384xf32>
    %56 = vector.shape_cast %55 : vector<1x16x384xf32> to vector<16x384xf32>
    %57 = vector.shape_cast %54 : vector<16x384xf32> to vector<1x16x384xf32>
    tpu.vector_store %arg7[%c0_39, %c0_40, %c0_41], %57 {strides = array<i32>} : memref<1x16x384xf32, #tpu.memory_space<vmem>>, vector<1x16x384xf32>,
    return
  }
  func.func @transform_0(%arg0: i32) -> (i32, i32, i32) {
    %c0_i32 = arith.constant 0 : i32
    %c0_i32_0 = arith.constant 0 : i32
    %c0_i32_1 = arith.constant 0 : i32
    return %arg0, %c0_i32, %c0_i32_0 : i32, i32, i32
  }
  func.func @transform_1(%arg0: i32) -> (i32, i32) {
    %c0_i32 = arith.constant 0 : i32
    %c0_i32_0 = arith.constant 0 : i32
    %c0_i32_1 = arith.constant 0 : i32
    return %c0_i32, %c0_i32_0 : i32, i32
  }
  func.func @transform_2(%arg0: i32) -> (i32, i32) {
    %c0_i32 = arith.constant 0 : i32
    %c0_i32_0 = arith.constant 0 : i32
    %c0_i32_1 = arith.constant 0 : i32
    return %c0_i32, %c0_i32_0 : i32, i32
  }
  func.func @transform_3(%arg0: i32) -> (i32, i32) {
    %c0_i32 = arith.constant 0 : i32
    %c0_i32_0 = arith.constant 0 : i32
    %c0_i32_1 = arith.constant 0 : i32
    return %c0_i32, %c0_i32_0 : i32, i32
  }
  func.func @transform_4(%arg0: i32) -> (i32, i32, i32) {
    %c0_i32 = arith.constant 0 : i32
    %c0_i32_0 = arith.constant 0 : i32
    %c0_i32_1 = arith.constant 0 : i32
    %c0_i32_2 = arith.constant 0 : i32
    return %c0_i32, %c0_i32_0, %c0_i32_1 : i32, i32, i32
  }
  func.func @transform_5(%arg0: i32) -> (i32, i32, i32) {
    %c0_i32 = arith.constant 0 : i32
    %c0_i32_0 = arith.constant 0 : i32
    %c0_i32_1 = arith.constant 0 : i32
    %c0_i32_2 = arith.constant 0 : i32
    return %c0_i32, %c0_i32_0, %c0_i32_1 : i32, i32, i32
  }
  func.func @transform_6(%arg0: i32) -> (i32, i32, i32) {
    %c0_i32 = arith.constant 0 : i32
    %c0_i32_0 = arith.constant 0 : i32
    %c0_i32_1 = arith.constant 0 : i32
    return %arg0, %c0_i32, %c0_i32_0 : i32, i32, i32
  }
}

</mosaic_0001>

<bundles_post_ra>
// kernel: tpu_custom_call.1
= control target key start
LH: loop header
LB: loop body
LE: loop exit
PB: predicated region body
PF: predicated region fallthrough
CT: control target
= control target key end

     0   :  { %11 = vsyncpa [#allocation4], 0  ;;  %s1576_s0 = inlined_call_operand.vmem [shape: bf16[2,8,384], index: 0, kind: input, shape index: {}]   ;;  %s1577_s1 = inlined_call_operand.vmem [shape: f32[1,384], index: 1, kind: input, shape index: {}]   ;;  %s1578_s2 = inlined_call_operand.vmem [shape: bf16[16,8], index: 2, kind: input, shape index: {}]   ;;  %s1579_s3 = inlined_call_operand.vmem [shape: f32[16,1], index: 3, kind: input, shape index: {}]   ;;  %s1580_s4 = inlined_call_operand.vmem [shape: bf16[1,16,144], index: 4, kind: input, shape index: {}]   ;;  %s1581_s5 = inlined_call_operand.vmem [shape: f32[1,16,1], index: 5, kind: input, shape index: {}]   ;;  %s1582_s6 = inlined_call_operand.hbm [shape: f32[2,16,384], index: 6, kind: output, shape index: {}]  }
   0x1   :  { %13 = vsyncpa [#allocation4 + $0x1], 0  ;;  %s1183_s21 = smov 0   ;;  %s1185_s22 = smov 0  }
   0x2   :  { %s1187_s23 = smov 0   ;;  %s1189_s24 = smov 0  }
   0x3 LB: > { %s1204_s25 = sadd.s32 4294967295, %s1131_s24   ;;  %s929_s26 = sadd.s32 4294967294, %s1131_s24   ;;  %s1131_s24 = sphi %s1189_s24, %s1588_s24   ;;  %s1127_s23 = sphi %s1187_s23, %s1587_s23   ;;  %s1123_s22 = sphi %s1185_s22, %s1586_s22   ;;  %s1119_s21 = sphi %s1183_s21, %s1585_s21  }
   0x4   : > { %s1208_s27 = sadd.s32 1, %s1131_s24   ;;  %s157_s28 = sadd.s32 1, %s1127_s23 }
   0x5   : > { %s154_s29 = ssub.s32 %s1131_s24, %s1208_s27  ;;  %p167_p0 = scmp.ne.s32.totalorder %s1127_s23, %s1123_s22 }
   0x6   : > { %p155_p1 = scmp.eq.s32.totalorder %s154_s29, 0  ;;  %p168_p2 = scmp.eq.s32.totalorder %s1204_s25, 1 }
   0x7   : > { %p173_p3 = scmp.ne.s32.totalorder %s1123_s22, %s1119_s21  ;;  %p174_p4 = scmp.eq.s32.totalorder %s929_s26, 1 }
   0x8   : > { %s1219_s30 = scalar_select %p155_p1, %s1127_s23, %s157_s28  }
   0x9   : > { %p1221_p5 = por %p168_p2, %p167_p0  ;;  %p1225_p6 = por %p174_p4, %p173_p3 }
   0xa   : > { %p932_p7 = scmp.ge.s32.totalorder %s1131_s24, 1  ;;  %p215_p8 = scmp.lt.s32.totalorder %s1131_s24, 3 }
   0xc   : > { %p216_p9 = pnand %p932_p7, %p215_p8 }
   0xd   : > { %p245_p10 = scmp.lt.s32.totalorder (!%p216_p9), %s1204_s25, 1  ;;  %v1133_v0 = vmov (!%p216_p9), 0.0   ;;  %v1134_v1 = vmov (!%p216_p9), 0   ;;  %v273_v2 = vld [vmem:[%s1579_s3] sm:$0xff] (!%p216_p9)  ;;  %vm1135_vm0 = vmmov (!%p216_p9), 0   ;;  %v274_v3 = vld [vmem:[%s1579_s3 + $0x8] sm:$0xff] (!%p216_p9)  ;;  %v254_v40 = vlaneseq (!%p216_p9) }
   0xe   : > { %219 = sbr.rel (%p216_p9) target bundleno = 862 (0x35e), region = 44  ;;  %950 = vmatprep.subr.bf16.mxu1 (!%p216_p9), %v1133_v0  ;;  %344 = vmatprep.mubr.bf16.mxu0 (!%p216_p9), %v1134_v1  ;;  %vm302_vm1 = vcmask (!%p216_p9), 1043456   ;;  %v1017_v9 = vld [vmem:[%s1578_s2] sm:$0xff] (!%p216_p9)   ;;  %vm298_vm2 = vcmask (!%p216_p9), 64512   ;;  %s1136_s20 = smov (!%p216_p9), 108   ;;  %vm517_vm7 = vcmask (!%p216_p9), 883712  }
   0xf   : > { %952 = vmatprep.mubr.msk.bf16.mxu1 (!%p216_p9), %vm1135_vm0, %v1133_v0  ;;  %1012 = vset.pattern.permute.xlu0 (!%p216_p9), %v1134_v1  ;;  %s1137_s26 = smov (!%p216_p9), 127   ;;  %s1138_s28 = smov (!%p216_p9), 92   ;;  %v251_v46 = vld [vmem:[%s1577_s1] sm:$0x7] (!%p216_p9)  ;;  %v255_v49 = vshrl.u32 (!%p216_p9), %v254_v40, 7  ;;  %vm529_vm8 = vcmask (!%p216_p9), 752640  }
  0x10   : > { %277 = vperm.xlu0 (!%p216_p9), %1012, %v273_v2   ;;  %1013 = vset.pattern.permute.xlu1 (!%p216_p9), %v1134_v1  ;;  %s1139_s29 = smov (!%p216_p9), 126   ;;  %s1140_s9 = smov (!%p216_p9), 91   ;;  %vm252_vm3 = vcmp.gt.f32.partialorder (!%p216_p9), %v251_v46, 0.0  ;;  %vm468_vm9 = vcmask (!%p216_p9), 1039360   ;;  %vm541_vm10 = vcmask (!%p216_p9), 744448   ;;  %vm480_vm11 = vcmask (!%p216_p9), 1031168  }
  0x11   : > { %460 = vrot.lane.b32.xlu1 (!%p216_p9), %v1134_v1, %s1137_s26  ;;  %s1141_s10 = smov (!%p216_p9), 110   ;;  %v256_v54 = vsub.s32 (!%p216_p9), 0, %v255_v49  ;;  %v253_v55 = vsel (!%p216_p9), %vm252_vm3, 1, %v1134_v1  ;;  %v264_v56 = vsub.s32 (!%p216_p9), 2, %v255_v49  ;;  %v260_v57 = vsub.s32 (!%p216_p9), 1, %v255_v49  ;;  %s1142_s13 = smov (!%p216_p9), 109  }
  0x12   : > { %s1143_s14 = smov (!%p216_p9), 90   ;;  %s1144_s15 = smov (!%p216_p9), 19   ;;  %vm492_vm12 = vcmask (!%p216_p9), 900096   ;;  %vm502_vm13 = vcmask (!%p216_p9), 891904   ;;  %vm650_vm14 = vcmask (!%p216_p9), 154624   ;;  %vm705_vm15 = vcmask (!%p216_p9), 130048  }
  0x13   : > { %v1271_v58 = vrot.slane (!%p216_p9), %v253_v55, %v256_v54  ;;  %v1273_v60 = vrot.slane (!%p216_p9), %v253_v55, %v264_v56  ;;  %v1275_v62 = vrot.slane (!%p216_p9), %v253_v55, %v260_v57  ;;  %vm553_vm0 = vcmask (!%p216_p9), 736256   ;;  %s1145_s18 = smov (!%p216_p9), [#allocation3]  }
  0x14   : > { %282 = vperm.xlu0 (!%p216_p9), %1012, %v274_v3   ;;  %s1073_s19 = sshll.u32 (!%p216_p9), %s1145_s18, 4  ;;  %s1074_s19 = int_to_ptr.vmem [resolvable:$false] %s1073_s19 }
  0x15   : > { %s246_s11 = scalar_select %p245_p10, %s1204_s25, 1  ;;  %472 = vrot.lane.b32.xlu1 %v1134_v1, %s1139_s29  ;;  %vm266_vm4 = vcmp.eq.s32.totalorder %v1271_v58, 1  ;;  %vm268_vm5 = vcmp.eq.s32.totalorder %v1273_v60, 1  ;;  %vm267_vm6 = vcmp.eq.s32.totalorder %v1275_v62, 1 }
  0x17   : > { %s957_s12 = smul.u32 12, %s246_s11 }
  0x18   : > { %515 = vrot.lane.b32.xlu0 %v1134_v1, %s1136_s20 }
  0x19   : > { %s249_s17 = scalar_lea.vmem %s1576_s0, %s957_s12  ;;  %484 = vrot.lane.b32.xlu1 %v1134_v1, %s1141_s10  ;;  %s958_s12 = smul.u32 768, %s1204_s25 }
  0x1a   : > { %v271_v4 = vld [vmem:[%s249_s17] sm:$0xff]  ;;  %v1016_v5 = vld [vmem:[%s249_s17 + $0x8] ss:$0 sps:$4 sm:$0xff]  }
  0x1b   : > { %v936_v6 = vcombine.high %v271_v4, %v271_v4  ;;  %v935_v7 = vcombine.low %v271_v4, %v271_v4  ;;  %v310_v8 = vsel %vm302_vm1, %v1016_v5, 0 }
  0x1c   : > { %951 = vmatpush3.bf16.msra.mxu1 %v310_v8  ;;  %527 = vrot.lane.b32.xlu0 %v1134_v1, %s1138_s28 }
  0x1d   : > { %938 = vmatprep.subr.msk.bf16.mxu0 %vm302_vm1, %v936_v6  ;;  %v304_v10 = vsel %vm302_vm1, %v935_v7, 0  ;;  %752 = vmatprep.subr.bf16.mxu1 %v1134_v1 }
  0x1e   : > { %313 = vmatpush1.bf16.msra.mxu0 %v304_v10 }
  0x1f   : > { %953 = vmatmul.mubr.msk.bf16.vlgmr.msra.gmra.mrb[0].mxu1 %vm298_vm2, %v1017_v9 }
  0x20   : > { %539 = vrot.lane.b32.xlu0 %v1134_v1, %s1140_s9 }
  0x21   : > { %939 = vmatmul.mubr.msk.bf16.vlgmr.msra.gmra.mrb[0].mxu0 %vm298_vm2, %v1017_v9 }
  0x8f   : > { %v278_v11 = vpop.permute.xlu0 %277 }
  0x93   : > { %v283_v12 = vpop.permute.xlu0 %282 }
  0xf2   : > { %v389_v13 = vpop.f32.mrb[0].mxu1 }
  0xf3   : > { %v1261_v15 = vadd.f32 %v389_v13, %v278_v11  ;;  %v954_v16 = vpop.f32.mrb[1].mxu1 }
  0xf4   : > { %v346_v14 = vpop.f32.mrb[0].mxu0  ;;  %v392_v19 = vpop.f32.mrb[2].mxu1 }
  0xf5   : > { %v347_v17 = vadd.f32 %v346_v14, %v278_v11  ;;  %v348_v18 = vpop.f32.mrb[1].mxu0  ;;  %v398_v20 = vsub.f32 0.0, %v1261_v15  ;;  %v1264_v23 = vadd.f32 %v392_v19, %v283_v12  ;;  %v955_v24 = vpop.f32.mrb[3].mxu1 }
  0xf6   : > { %v349_v21 = vadd.f32 %v348_v18, %v278_v11  ;;  %v350_v22 = vpop.f32.mrb[2].mxu0  ;;  %v461_v19 = vpop.permute.xlu1 %460 }
  0xf7   : > { %v396_v25 = vsub.f32 0.0, %v347_v17  ;;  %v351_v26 = vadd.f32 %v350_v22, %v283_v12  ;;  %v352_v27 = vpop.f32.mrb[3].mxu0  ;;  %v406_v28 = vmul.f32 1.442695, %v398_v20  ;;  %v401_v30 = vsub.f32 0.0, %v1264_v23  ;;  %v516_v20 = vpop.permute.xlu0 %515 }
  0xf8   : > { %v397_v29 = vsub.f32 0.0, %v349_v21  ;;  %v353_v31 = vadd.f32 %v352_v27, %v283_v12 }
  0xf9   : > { %v402_v32 = vmul.f32 1.442695, %v396_v25  ;;  %v399_v33 = vsub.f32 0.0, %v351_v26  ;;  %1021 = vpow2.f32 %v406_v28  ;;  %v412_v35 = vmul.f32 1.442695, %v401_v30 }
  0xfa   : > { %v404_v34 = vmul.f32 1.442695, %v397_v29  ;;  %v400_v36 = vsub.f32 0.0, %v353_v31 }
  0xfb   : > { %1023 = vpow2.f32 %v402_v32  ;;  %v408_v37 = vmul.f32 1.442695, %v399_v33  ;;  %v528_v22 = vpop.permute.xlu0 %527 }
  0xfc   : > { %1025 = vpow2.f32 %v404_v34  ;;  %v410_v38 = vmul.f32 1.442695, %v400_v36 }
  0xfd   : > { %1027 = vpow2.f32 %v408_v37 }
  0xfe   : > { %1029 = vpow2.f32 %v412_v35 }
  0xff   : > { %1031 = vpow2.f32 %v410_v38  ;;  %v540_v24 = vpop.permute.xlu0 %539 }
 0x103   : > { %v1022_v39 = vpop.eup %1021 }
 0x104   : > { %v416_v42 = vadd.f32 1.0, %v1022_v39 }
 0x105   : > { %v1024_v41 = vpop.eup %1023 }
 0x106   : > { %v1026_v43 = vpop.eup %1025  ;;  %v414_v44 = vadd.f32 1.0, %v1024_v41  ;;  %1033 = vrcp.f32 %v416_v42 }
 0x107   : > { %v1028_v45 = vpop.eup %1027  ;;  %v415_v47 = vadd.f32 1.0, %v1026_v43 }
 0x108   : > { %v1030_v48 = vpop.eup %1029  ;;  %1035 = vrcp.f32 %v414_v44  ;;  %v417_v50 = vadd.f32 1.0, %v1028_v45 }
 0x109   : > { %v1032_v51 = vpop.eup %1031  ;;  %1037 = vrcp.f32 %v415_v47  ;;  %v419_v52 = vadd.f32 1.0, %v1030_v48 }
 0x10a   : > { %1039 = vrcp.f32 %v417_v50  ;;  %v418_v53 = vadd.f32 1.0, %v1032_v51 }
 0x10b   : > { %1041 = vrcp.f32 %v419_v52 }
 0x10c   : > { %1043 = vrcp.f32 %v418_v53 }
 0x110   : > { %v1034_v59 = vpop.eup %1033 }
 0x111   : > { %v428_v3 = vmul.f32 %v1034_v59, %v1261_v15 }
 0x112   : > { %v1036_v61 = vpop.eup %1035 }
 0x113   : > { %v1038_v63 = vpop.eup %1037  ;;  %v426_v0 = vmul.f32 %v1036_v61, %v347_v17  ;;  %v434_v12 = vsel %vm268_vm5, %v428_v3, 0.0 }
 0x114   : > { %v1040_v2 = vpop.eup %1039  ;;  %v427_v5 = vmul.f32 %v1038_v63, %v349_v21  ;;  %v473_v21 = vpop.permute.xlu1 %472 }
 0x115   : > { %v1042_v4 = vpop.eup %1041  ;;  %v429_v6 = vmul.f32 %v1040_v2, %v351_v26  ;;  %v432_v9 = vsel %vm266_vm4, %v426_v0, 0.0 }
 0x116   : > { %v1044_v7 = vpop.eup %1043  ;;  %v431_v8 = vmul.f32 %v1042_v4, %v1264_v23  ;;  %v433_v15 = vsel %vm267_vm6, %v427_v5, 0.0 }
 0x117   : > { %v435_v10 = vsel %vm266_vm4, %v429_v6, 0.0  ;;  %v430_v11 = vmul.f32 %v1044_v7, %v353_v31 }
 0x118   : > { %v1288_v13 = vpack.c.bf16 %v435_v10, %v432_v9  ;;  %v437_v14 = vsel %vm268_vm5, %v431_v8, 0.0  ;;  %v485_v23 = vpop.permute.xlu1 %484 }
 0x119   : > { %v1294_v16 = vpack.c.bf16 %v437_v14, %v434_v12  ;;  %v436_v17 = vsel %vm267_vm6, %v430_v11, 0.0  ;;  %v1018_v14 = vld [vmem:[%s1580_s4 + $0x4] ss:$8 sps:$4 sm:$0xff]  }
 0x11a   : > { %v1298_v18 = vpack.c.bf16 %v436_v17, %v433_v15  ;;  %462 = vrot.lane.b32.xlu1 %v1288_v13, %s1137_s26  ;;  %944 = vmatprep.mubr.msk.bf16.mxu1 %vm705_vm15, %v1018_v14 }
 0x11b   : > { %466 = vrot.lane.b32.xlu0 %v1294_v16, %s1137_s26  ;;  %943 = vmatprep.mubr.msk.bf16.mxu0 %vm705_vm15, %v1018_v14 }
 0x11e   : > { %509 = vrot.lane.b32.xlu1 %v1288_v13, %s1136_s20 }
 0x11f   : > { %474 = vrot.lane.b32.xlu0 %v1288_v13, %s1139_s29 }
 0x122   : > { %513 = vrot.lane.b32.xlu1 %v1294_v16, %s1136_s20 }
 0x123   : > { %478 = vrot.lane.b32.xlu0 %v1294_v16, %s1139_s29 }
 0x126   : > { %521 = vrot.lane.b32.xlu1 %v1288_v13, %s1138_s28 }
 0x127   : > { %486 = vrot.lane.b32.xlu0 %v1288_v13, %s1141_s10 }
 0x12a   : > { %525 = vrot.lane.b32.xlu1 %v1294_v16, %s1138_s28 }
 0x12b   : > { %490 = vrot.lane.b32.xlu0 %v1294_v16, %s1141_s10 }
 0x12e   : > { %533 = vrot.lane.b32.xlu1 %v1288_v13, %s1140_s9 }
 0x12f   : > { %496 = vrot.lane.b32.xlu0 %v1288_v13, %s1142_s13 }
 0x132   : > { %537 = vrot.lane.b32.xlu1 %v1294_v16, %s1140_s9 }
 0x133   : > { %500 = vrot.lane.b32.xlu0 %v1294_v16, %s1142_s13 }
 0x136   : > { %545 = vrot.lane.b32.xlu1 %v1288_v13, %s1143_s14 }
 0x137   : > { %551 = vrot.lane.b32.xlu0 %v1134_v1, %s1143_s14 }
 0x13a   : > { %464 = vrot.lane.b32.xlu1 %v1298_v18, %s1137_s26 }
 0x13b   : > { %584 = vrot.lane.b32.xlu0 %v1294_v16, %s1144_s15 }
 0x13e   : > { %476 = vrot.lane.b32.xlu1 %v1298_v18, %s1139_s29 }
 0x13f   : > { %511 = vrot.lane.b32.xlu0 %v1298_v18, %s1136_s20  ;;  %s1075_s20 = scalar_lea.vmem %s1074_s19, 1536 }
 0x142   : > { %488 = vrot.lane.b32.xlu1 %v1298_v18, %s1141_s10 }
 0x143   : > { %523 = vrot.lane.b32.xlu0 %v1298_v18, %s1138_s28 }
 0x146   : > { %498 = vrot.lane.b32.xlu1 %v1298_v18, %s1142_s13 }
 0x147   : > { %535 = vrot.lane.b32.xlu0 %v1298_v18, %s1140_s9  ;;  %s242_s9 = sand.u32 1, %s1123_s22  }
 0x148   : > { %s956_s10 = smul.u32 48, %s242_s9  ;;  %s1535_s16 = scalar_lea.sflag [#allocation4], %s242_s9 }
 0x14a   : > { %549 = vrot.lane.b32.xlu1 %v1294_v16, %s1143_s14  ;;  %s1504_s11 = scalar_lea.vmem [#allocation3], %s956_s10 }
 0x14b   : > { %547 = vrot.lane.b32.xlu0 %v1298_v18, %s1143_s14  ;;  %s867_s13 = sshll.u32 %s1504_s11, 4  ;;  %s1528_s13 = int_to_ptr.vmem [resolvable:$true] %s867_s13 }
 0x14c   : > { %s1069_s17 = scalar_lea.vmem %s1528_s13, 768  ;;  %p1076_p0 = scmp.lt.s32.totalorder %s1528_s13, %s1074_s19 }
 0x14d   : > { %p1070_p11 = scmp.ne.s32.totalorder %s1528_s13, %s1069_s17  ;;  %p1077_p1 = scmp.lt.s32.totalorder %s1075_s20, %s1069_s17 }
 0x14e   : > { %580 = vrot.lane.b32.xlu1 %v1288_v13, %s1144_s15 }
 0x14f   : > { %582 = vrot.lane.b32.xlu0 %v1298_v18, %s1144_s15  ;;  %p1071_p12 = pnand %p1070_p11, %p1221_p5  ;;  %p1078_p2 = por %p1077_p1, %p1076_p0 }
 0x151   : > { %p1072_p13 = pneg %p1071_p12 }
 0x152   : > { %578 = vrot.lane.b32.xlu1 %v1134_v1, %s1144_s15 }
 0x153   : > { %p1079_p3 = pnand %p1078_p2, %p1072_p13 }
 0x18c   : > { %v463_v25 = vpop.permute.xlu1 %462 }
 0x18d   : > { %v467_v26 = vpop.permute.xlu0 %466  ;;  %v469_v47 = vsel %vm468_vm9, %v461_v19, %v463_v25 }
 0x18e   : > { %592 = vrot.lane.b32.xlu0 %v467_v26, %s1144_s15 }
 0x190   : > { %v1352_v27 = vpop.permute.xlu1 %509 }
 0x191   : > { %v475_v28 = vpop.permute.xlu0 %474 }
 0x192   : > { %v481_v51 = vsel %vm480_vm11, %v473_v21, %v475_v28 }
 0x194   : > { %v1354_v29 = vpop.permute.xlu1 %513 }
 0x195   : > { %v479_v30 = vpop.permute.xlu0 %478  ;;  %v520_v41 = vsel %vm517_vm7, %v1354_v29, %v516_v20 }
 0x196   : > { %600 = vrot.lane.b32.xlu0 %v479_v30, %s1144_s15 }
 0x198   : > { %v1357_v31 = vpop.permute.xlu1 %521 }
 0x199   : > { %v1359_v32 = vpop.permute.xlu0 %486 }
 0x19a   : > { %v493_v55 = vsel %vm492_vm12, %v485_v23, %v1359_v32  ;;  %v558_v23 = vld [vmem:[%s1581_s5 + $0x8] sm:$0xff] }
 0x19c   : > { %v1361_v33 = vpop.permute.xlu1 %525 }
 0x19d   : > { %v491_v34 = vpop.permute.xlu0 %490  ;;  %v532_v44 = vsel %vm529_vm8, %v1361_v33, %v528_v22 }
 0x19e   : > { %608 = vrot.lane.b32.xlu0 %v491_v34, %s1144_s15 }
 0x1a0   : > { %v1364_v35 = vpop.permute.xlu1 %533 }
 0x1a1   : > { %v1366_v36 = vpop.permute.xlu0 %496 }
 0x1a2   : > { %610 = vrot.lane.b32.xlu1 %v1366_v36, %s1144_s15 }
 0x1a4   : > { %v1370_v37 = vpop.permute.xlu1 %537 }
 0x1a5   : > { %v501_v38 = vpop.permute.xlu0 %500  ;;  %v544_v48 = vsel %vm541_vm10, %v1370_v37, %v540_v24 }
 0x1a6   : > { %616 = vrot.lane.b32.xlu0 %v501_v38, %s1144_s15  ;;  %618 = vrot.lane.b32.xlu1 %v1352_v27, %s1144_s15 }
 0x1a8   : > { %v1375_v39 = vpop.permute.xlu1 %545 }
 0x1a9   : > { %v1377_v40 = vpop.permute.xlu0 %551 }
 0x1aa   : > { %624 = vrot.lane.b32.xlu0 %v520_v41, %s1144_s15  ;;  %626 = vrot.lane.b32.xlu1 %v1357_v31, %s1144_s15 }
 0x1ac   : > { %v465_v42 = vpop.permute.xlu1 %464 }
 0x1ad   : > { %v585_v43 = vpop.permute.xlu0 %584  ;;  %v471_v52 = vsel %vm468_vm9, %v465_v42, %v467_v26  ;;  %v470_v61 = vsel %vm468_vm9, %v463_v25, %v465_v42  ;;  %v557_v25 = vld [vmem:[%s1581_s5] sm:$0xff] }
 0x1ae   : > { %632 = vrot.lane.b32.xlu0 %v532_v44, %s1144_s15  ;;  %634 = vrot.lane.b32.xlu1 %v1364_v35, %s1144_s15 }
 0x1b0   : > { %v477_v45 = vpop.permute.xlu1 %476 }
 0x1b1   : > { %v512_v46 = vpop.permute.xlu0 %511  ;;  %v483_v56 = vsel %vm480_vm11, %v477_v45, %v479_v30  ;;  %v482_v3 = vsel %vm480_vm11, %v475_v28, %v477_v45 }
 0x1b2   : > { %586 = vrot.lane.b32.xlu1 %v469_v47, %s1144_s15  ;;  %640 = vrot.lane.b32.xlu0 %v544_v48, %s1144_s15  ;;  %v519_v10 = vsel %vm517_vm7, %v512_v46, %v1354_v29  ;;  %v518_v17 = vsel %vm517_vm7, %v1352_v27, %v512_v46 }
 0x1b4   : > { %v489_v49 = vpop.permute.xlu1 %488 }
 0x1b5   : > { %v524_v50 = vpop.permute.xlu0 %523  ;;  %v495_v63 = vsel %vm492_vm12, %v489_v49, %v491_v34  ;;  %v494_v9 = vsel %vm492_vm12, %v1359_v32, %v489_v49 }
 0x1b6   : > { %594 = vrot.lane.b32.xlu1 %v481_v51, %s1144_s15  ;;  %590 = vrot.lane.b32.xlu0 %v471_v52, %s1144_s15  ;;  %v531_v11 = vsel %vm529_vm8, %v524_v50, %v1361_v33  ;;  %v530_v19 = vsel %vm529_vm8, %v1357_v31, %v524_v50 }
 0x1b8   : > { %v499_v53 = vpop.permute.xlu1 %498 }
 0x1b9   : > { %v536_v54 = vpop.permute.xlu0 %535  ;;  %v504_v4 = vsel %vm502_vm13, %v499_v53, %v501_v38  ;;  %v503_v12 = vsel %vm502_vm13, %v1366_v36, %v499_v53 }
 0x1ba   : > { %602 = vrot.lane.b32.xlu1 %v493_v55, %s1144_s15  ;;  %598 = vrot.lane.b32.xlu0 %v483_v56, %s1144_s15  ;;  %v543_v15 = vsel %vm541_vm10, %v536_v54, %v1370_v37  ;;  %v542_v21 = vsel %vm541_vm10, %v1364_v35, %v536_v54 }
 0x1bc   : > { %v550_v57 = vpop.permute.xlu1 %549 }
 0x1bd   : > { %v548_v59 = vpop.permute.xlu0 %547  ;;  %v556_v22 = vsel %vm553_vm0, %v550_v57, %v1377_v40 }
 0x1be   : > { %588 = vrot.lane.b32.xlu1 %v470_v61, %s1144_s15  ;;  %606 = vrot.lane.b32.xlu0 %v495_v63, %s1144_s15  ;;  %v555_v20 = vsel %vm553_vm0, %v548_v59, %v550_v57  ;;  %v554_v24 = vsel %vm553_vm0, %v1375_v39, %v548_v59 }
 0x1c0   : > { %v581_v0 = vpop.permute.xlu1 %580 }
 0x1c1   : > { %v583_v2 = vpop.permute.xlu0 %582 }
 0x1c2   : > { %v653_v5 = vsel %vm650_vm14, %v583_v2, %v585_v43  ;;  %596 = vrot.lane.b32.xlu1 %v482_v3, %s1144_s15  ;;  %614 = vrot.lane.b32.xlu0 %v504_v4, %s1144_s15  ;;  %v652_v6 = vsel %vm650_vm14, %v581_v0, %v583_v2 }
 0x1c3   : > { %709 = vmatprep.subr.bf16.mxu0 %v652_v6  ;;  %753 = vmatpush1.bf16.msra.mxu1 %v653_v5 }
 0x1c4   : > { %v579_v7 = vpop.permute.xlu1 %578  ;;  %754 = vmatprep.subr.bf16.mxu1 %v1134_v1 }
 0x1c5   : > { %v651_v8 = vsel %vm650_vm14, %v579_v7, %v581_v0 }
 0x1c6   : > { %604 = vrot.lane.b32.xlu1 %v494_v9, %s1144_s15  ;;  %622 = vrot.lane.b32.xlu0 %v519_v10, %s1144_s15 }
 0x1c7   : > { %710 = vmatpush1.bf16.msra.mxu0 %v651_v8 }
 0x1ca   : > { %630 = vrot.lane.b32.xlu0 %v531_v11, %s1144_s15  ;;  %612 = vrot.lane.b32.xlu1 %v503_v12, %s1144_s15 }
 0x1ce   : > { %638 = vrot.lane.b32.xlu0 %v543_v15, %s1144_s15  ;;  %620 = vrot.lane.b32.xlu1 %v518_v17, %s1144_s15 }
 0x1d2   : > { %628 = vrot.lane.b32.xlu1 %v530_v19, %s1144_s15  ;;  %646 = vrot.lane.b32.xlu0 %v555_v20, %s1144_s15 }
 0x1d6   : > { %636 = vrot.lane.b32.xlu1 %v542_v21, %s1144_s15  ;;  %648 = vrot.lane.b32.xlu0 %v556_v22, %s1144_s15 }
 0x1da   : > { %644 = vrot.lane.b32.xlu1 %v554_v24, %s1144_s15  ;;  %566 = vperm.xlu0 %1012, %v558_v23  }
 0x1de   : > { %642 = vrot.lane.b32.xlu1 %v1375_v39, %s1144_s15  ;;  %s1526_s15 = scalar_lea.hbm %s1582_s6, %s958_s12 }
 0x1e2   : > { %561 = vperm.xlu1 %1013, %v557_v25  }
 0x200   : > { %v593_v26 = vpop.permute.xlu0 %592 }
 0x208   : > { %v601_v27 = vpop.permute.xlu0 %600 }
 0x210   : > { %v609_v28 = vpop.permute.xlu0 %608 }
 0x214   : > { %v611_v29 = vpop.permute.xlu1 %610 }
 0x218   : > { %v617_v30 = vpop.permute.xlu0 %616  ;;  %v619_v31 = vpop.permute.xlu1 %618 }
 0x21c   : > { %v625_v32 = vpop.permute.xlu0 %624  ;;  %v1455_v33 = vpop.permute.xlu1 %626 }
 0x220   : > { %v633_v34 = vpop.permute.xlu0 %632  ;;  %v1457_v35 = vpop.permute.xlu1 %634 }
 0x224   : > { %v641_v36 = vpop.permute.xlu0 %640  ;;  %v587_v37 = vpop.permute.xlu1 %586 }
 0x228   : > { %v591_v38 = vpop.permute.xlu0 %590  ;;  %v595_v39 = vpop.permute.xlu1 %594 }
 0x229   : > { %v656_v40 = vsel %vm650_vm14, %v591_v38, %v593_v26 }
 0x22a   : > { %755 = vmatpush1.bf16.msra.mxu1 %v656_v40 }
 0x22b   : > { %756 = vmatprep.subr.bf16.mxu1 %v1134_v1 }
 0x22c   : > { %v599_v41 = vpop.permute.xlu0 %598  ;;  %v603_v42 = vpop.permute.xlu1 %602 }
 0x22d   : > { %v659_v43 = vsel %vm650_vm14, %v599_v41, %v601_v27 }
 0x22e   : > { %757 = vmatpush1.bf16.msra.mxu1 %v659_v43 }
 0x22f   : > { %758 = vmatprep.subr.bf16.mxu1 %v1134_v1 }
 0x230   : > { %v607_v44 = vpop.permute.xlu0 %606  ;;  %v589_v45 = vpop.permute.xlu1 %588 }
 0x231   : > { %v662_v46 = vsel %vm650_vm14, %v607_v44, %v609_v28  ;;  %v654_v47 = vsel %vm650_vm14, %v587_v37, %v589_v45  ;;  %v655_v48 = vsel %vm650_vm14, %v589_v45, %v591_v38 }
 0x232   : > { %711 = vmatprep.subr.bf16.mxu0 %v655_v48  ;;  %759 = vmatpush1.bf16.msra.mxu1 %v662_v46 }
 0x233   : > { %712 = vmatpush1.bf16.msra.mxu0 %v654_v47  ;;  %760 = vmatprep.subr.bf16.mxu1 %v1134_v1 }
 0x234   : > { %v615_v49 = vpop.permute.xlu0 %614  ;;  %v597_v50 = vpop.permute.xlu1 %596 }
 0x235   : > { %v665_v51 = vsel %vm650_vm14, %v615_v49, %v617_v30  ;;  %v657_v52 = vsel %vm650_vm14, %v595_v39, %v597_v50  ;;  %v658_v53 = vsel %vm650_vm14, %v597_v50, %v599_v41 }
 0x236   : > { %713 = vmatprep.subr.bf16.mxu0 %v658_v53  ;;  %761 = vmatpush1.bf16.msra.mxu1 %v665_v51 }
 0x237   : > { %714 = vmatpush1.bf16.msra.mxu0 %v657_v52  ;;  %762 = vmatprep.subr.bf16.mxu1 %v1134_v1 }
 0x238   : > { %v623_v54 = vpop.permute.xlu0 %622  ;;  %v605_v55 = vpop.permute.xlu1 %604 }
 0x239   : > { %v668_v56 = vsel %vm650_vm14, %v623_v54, %v625_v32  ;;  %v660_v57 = vsel %vm650_vm14, %v603_v42, %v605_v55  ;;  %v661_v59 = vsel %vm650_vm14, %v605_v55, %v607_v44 }
 0x23a   : > { %715 = vmatprep.subr.bf16.mxu0 %v661_v59  ;;  %763 = vmatpush1.bf16.msra.mxu1 %v668_v56 }
 0x23b   : > { %716 = vmatpush1.bf16.msra.mxu0 %v660_v57  ;;  %764 = vmatprep.subr.bf16.mxu1 %v1134_v1 }
 0x23c   : > { %v631_v61 = vpop.permute.xlu0 %630  ;;  %v613_v63 = vpop.permute.xlu1 %612 }
 0x23d   : > { %v671_v0 = vsel %vm650_vm14, %v631_v61, %v633_v34  ;;  %v663_v2 = vsel %vm650_vm14, %v611_v29, %v613_v63  ;;  %v664_v3 = vsel %vm650_vm14, %v613_v63, %v615_v49 }
 0x23e   : > { %717 = vmatprep.subr.bf16.mxu0 %v664_v3  ;;  %765 = vmatpush1.bf16.msra.mxu1 %v671_v0 }
 0x23f   : > { %718 = vmatpush1.bf16.msra.mxu0 %v663_v2  ;;  %766 = vmatprep.subr.bf16.mxu1 %v1134_v1 }
 0x240   : > { %v639_v4 = vpop.permute.xlu0 %638  ;;  %v621_v5 = vpop.permute.xlu1 %620 }
 0x241   : > { %v674_v6 = vsel %vm650_vm14, %v639_v4, %v641_v36  ;;  %v666_v7 = vsel %vm650_vm14, %v619_v31, %v621_v5  ;;  %v667_v8 = vsel %vm650_vm14, %v621_v5, %v623_v54 }
 0x242   : > { %719 = vmatprep.subr.bf16.mxu0 %v667_v8  ;;  %767 = vmatpush1.bf16.msra.mxu1 %v674_v6  ;;  %v837_v8 = vunpack.c.l.bf16 %v1294_v16 }
 0x243   : > { %720 = vmatpush1.bf16.msra.mxu0 %v666_v7  ;;  %768 = vmatprep.subr.bf16.mxu1 %v1134_v1  ;;  %v1020_v1 = vld [vmem:[%s1580_s4] ss:$8 sps:$4 sm:$0xff]  }
 0x244   : > { %v647_v9 = vpop.permute.xlu0 %646  ;;  %v629_v10 = vpop.permute.xlu1 %628 }
 0x245   : > { %v669_v11 = vsel %vm650_vm14, %v1455_v33, %v629_v10  ;;  %v670_v12 = vsel %vm650_vm14, %v629_v10, %v631_v61 }
 0x246   : > { %721 = vmatprep.subr.bf16.mxu0 %v670_v12  ;;  %v840_v12 = vunpack.c.h.bf16 %v1294_v16 }
 0x247   : > { %722 = vmatpush1.bf16.msra.mxu0 %v669_v11 }
 0x248   : > { %v649_v14 = vpop.permute.xlu0 %648  ;;  %v637_v15 = vpop.permute.xlu1 %636 }
 0x249   : > { %v677_v17 = vsel %vm650_vm14, %v647_v9, %v649_v14  ;;  %v672_v19 = vsel %vm650_vm14, %v1457_v35, %v637_v15  ;;  %v673_v20 = vsel %vm650_vm14, %v637_v15, %v639_v4 }
 0x24a   : > { %723 = vmatprep.subr.bf16.mxu0 %v673_v20  ;;  %769 = vmatpush1.bf16.msra.mxu1 %v677_v17 }
 0x24b   : > { %724 = vmatpush1.bf16.msra.mxu0 %v672_v19 }
 0x24c   : > { %v645_v21 = vpop.permute.xlu1 %644 }
 0x24d   : > { %785 = vmatmul.mubr.bf16.vlgmr.msra.gmra.mrb[4].mxu1 %v1020_v1  ;;  %v676_v22 = vsel %vm650_vm14, %v645_v21, %v647_v9 }
 0x24e   : > { %725 = vmatprep.subr.bf16.mxu0 %v676_v22 }
 0x250   : > { %v643_v23 = vpop.permute.xlu1 %642 }
 0x251   : > { %v675_v24 = vsel %vm650_vm14, %v643_v23, %v645_v21  ;;  %v835_v21 = vunpack.c.l.bf16 %v1288_v13  ;;  %v836_v23 = vunpack.c.l.bf16 %v1298_v18 }
 0x252   : > { %726 = vmatpush1.bf16.msra.mxu0 %v675_v24 }
 0x255   : > { %742 = vmatmul.mubr.bf16.vlgmr.msra.gmra.mrb[4].mxu0 %v1020_v1 }
 0x259   : > { %v567_v29 = vpop.permute.xlu0 %566 }
 0x261   : > { %v562_v25 = vpop.permute.xlu1 %561 }
 0x320   : > { %v786_v26 = vpop.f32.mrb[4].mxu1 }
 0x321   : > { %v787_v27 = vadd.f32 %v786_v26, %v562_v25  ;;  %v788_v28 = vpop.f32.mrb[5].mxu1 }
 0x322   : > { %v789_v30 = vpop.f32.mrb[6].mxu1 }
 0x323   : > { %v795_v31 = vsub.f32 0.0, %v787_v27  ;;  %v790_v32 = vadd.f32 %v789_v30, %v567_v29  ;;  %v791_v33 = vpop.f32.mrb[7].mxu1 }
 0x325   : > { %v803_v34 = vmul.f32 1.442695, %v795_v31  ;;  %v798_v35 = vsub.f32 0.0, %v790_v32  ;;  %v839_v31 = vunpack.c.h.bf16 %v1298_v18 }
 0x327   : > { %1045 = vpow2.f32 %v803_v34  ;;  %v809_v36 = vmul.f32 1.442695, %v798_v35 }
 0x328   : > { %v743_v37 = vpop.f32.mrb[4].mxu0 }
 0x329   : > { %1047 = vpow2.f32 %v809_v36  ;;  %v744_v38 = vadd.f32 %v743_v37, %v562_v25  ;;  %v745_v39 = vpop.f32.mrb[5].mxu0 }
 0x32a   : > { %v746_v40 = vadd.f32 %v745_v39, %v562_v25  ;;  %v747_v41 = vpop.f32.mrb[6].mxu0 }
 0x32b   : > { %v793_v42 = vsub.f32 0.0, %v744_v38  ;;  %v748_v43 = vadd.f32 %v747_v41, %v567_v29  ;;  %v749_v44 = vpop.f32.mrb[7].mxu0 }
 0x32c   : > { %v794_v45 = vsub.f32 0.0, %v746_v40  ;;  %v750_v46 = vadd.f32 %v749_v44, %v567_v29 }
 0x32d   : > { %v799_v47 = vmul.f32 1.442695, %v793_v42  ;;  %v796_v48 = vsub.f32 0.0, %v748_v43 }
 0x32e   : > { %v801_v49 = vmul.f32 1.442695, %v794_v45  ;;  %v797_v50 = vsub.f32 0.0, %v750_v46 }
 0x32f   : > { %1049 = vpow2.f32 %v799_v47  ;;  %v805_v51 = vmul.f32 1.442695, %v796_v48 }
 0x330   : > { %1051 = vpow2.f32 %v801_v49  ;;  %v807_v52 = vmul.f32 1.442695, %v797_v50 }
 0x331   : > { %v1046_v53 = vpop.eup %1045  ;;  %1053 = vpow2.f32 %v805_v51 }
 0x332   : > { %v813_v54 = vadd.f32 1.0, %v1046_v53  ;;  %1055 = vpow2.f32 %v807_v52 }
 0x333   : > { %v1048_v55 = vpop.eup %1047 }
 0x334   : > { %1057 = vrcp.f32 %v813_v54  ;;  %v816_v56 = vadd.f32 1.0, %v1048_v55 }
 0x336   : > { %1059 = vrcp.f32 %v816_v56 }
 0x339   : > { %v1050_v57 = vpop.eup %1049 }
 0x33a   : > { %v1052_v59 = vpop.eup %1051  ;;  %v811_v61 = vadd.f32 1.0, %v1050_v57 }
 0x33b   : > { %v1054_v63 = vpop.eup %1053  ;;  %v812_v0 = vadd.f32 1.0, %v1052_v59 }
 0x33c   : > { %v1056_v2 = vpop.eup %1055  ;;  %1061 = vrcp.f32 %v811_v61  ;;  %v814_v3 = vadd.f32 1.0, %v1054_v63 }
 0x33d   : > { %1063 = vrcp.f32 %v812_v0  ;;  %v815_v4 = vadd.f32 1.0, %v1056_v2 }
 0x33e   : > { %v1058_v5 = vpop.eup %1057  ;;  %1065 = vrcp.f32 %v814_v3 }
 0x33f   : > { %v825_v6 = vmul.f32 %v1058_v5, %v787_v27  ;;  %1067 = vrcp.f32 %v815_v4  ;;  %v838_v27 = vunpack.c.h.bf16 %v1288_v13 }
 0x340   : > { %v1060_v7 = vpop.eup %1059 }
 0x341   : > { %v831_v9 = vsel %vm268_vm5, %v825_v6, 0.0  ;;  %v828_v10 = vmul.f32 %v1060_v7, %v790_v32 }
 0x342   : > { %v843_v11 = vadd.f32 %v837_v8, %v831_v9 }
 0x343   : > { %v834_v14 = vsel %vm268_vm5, %v828_v10, 0.0 }
 0x344   : > { %849 = vst [vmem:[%s1504_s11 + $0x10] sm:$0xff] %v843_v11  ;;  %v846_v15 = vadd.f32 %v840_v12, %v834_v14 }
 0x346   : > { %v1062_v17 = vpop.eup %1061  ;;  %852 = vst [vmem:[%s1504_s11 + $0x28] sm:$0xff] %v846_v15 }
 0x347   : > { %v1064_v19 = vpop.eup %1063  ;;  %v823_v20 = vmul.f32 %v1062_v17, %v744_v38 }
 0x348   : > { %v1066_v1 = vpop.eup %1065  ;;  %v824_v22 = vmul.f32 %v1064_v19, %v746_v40 }
 0x349   : > { %v1068_v16 = vpop.eup %1067  ;;  %v829_v60 = vsel %vm266_vm4, %v823_v20, 0.0  ;;  %v826_v24 = vmul.f32 %v1066_v1, %v748_v43 }
 0x34a   : > { %v841_v25 = vadd.f32 %v835_v21, %v829_v60  ;;  %v830_v26 = vsel %vm267_vm6, %v824_v22, 0.0  ;;  %v827_v28 = vmul.f32 %v1068_v16, %v750_v46 }
 0x34b   : > { %v842_v29 = vadd.f32 %v836_v23, %v830_v26  ;;  %v832_v30 = vsel %vm266_vm4, %v826_v24, 0.0 }
 0x34c   : > { %847 = vst [vmem:[%s1504_s11] sm:$0xff] %v841_v25  ;;  %v844_v32 = vadd.f32 %v838_v27, %v832_v30  ;;  %v833_v33 = vsel %vm267_vm6, %v827_v28, 0.0 }
 0x34d   : > { %848 = vst [vmem:[%s1504_s11 + $0x8] sm:$0xff] %v842_v29  ;;  %v845_v58 = vadd.f32 %v839_v31, %v833_v33 }
 0x34e   : > { %850 = vst [vmem:[%s1504_s11 + $0x18] sm:$0xff] %v844_v32 }
 0x34f   : > { %851 = vst [vmem:[%s1504_s11 + $0x20] sm:$0xff] %v845_v58 }
 0x350   : > { %1082 = shalt.err (!%p1079_p3)
}
 0x351   : > { %s1083_s26 = scalar_lea.hbm %s1526_s15, 768  ;;  %s1087_s9 = scalar_lea.hbm %s1582_s6, 1536 }
 0x352   : > { %p1084_p4 = scmp.ne.s32.totalorder %s1526_s15, %s1083_s26  ;;  %p1088_p9 = scmp.lt.u32.totalorder %s1526_s15, %s1582_s6 }
 0x353   : > { %p1089_p10 = scmp.lt.u32.totalorder %s1087_s9, %s1083_s26  ;;  %p1091_p12 = scmp.lt.u32.totalorder %s1083_s26, %s1526_s15 }
 0x354   : > { %p1085_p7 = pnand %p1084_p4, %p1221_p5 }
 0x355   : > { %p1090_p11 = por %p1089_p10, %p1088_p9 }
 0x356   : > { %p1086_p8 = pneg %p1085_p7 }
 0x357   : > { %p1092_p13 = por %p1091_p12, %p1090_p11 }
 0x359   : > { %p1093_p0 = pnand %p1092_p13, %p1086_p8 }
 0x35b   : > { %1096 = shalt.err (!%p1093_p0)
}
 0x35c   : > { %s1146_s12 = smov 384   ;;  %s1147_s25 = smov 24  }
 0x35d   : > { %959 = dma.vmem_to_hbm [thread:$0]  (%p1221_p5), %s1528_s13, 768, %s1526_s15, %s1535_s16, %s1146_s12, %s1146_s12, %s1147_s25  }
 0x35e PF: > { %p965_p1 = scmp.ge.s32.totalorder %s1131_s24, 2  ;;  %s882_s14 = sand.u32 1, %s1119_s21  }
 0x35f   : > { %s883_s17 = scalar_lea.sflag [#allocation4], %s882_s14 }
 0x360   : > { %p962_p2 = pnand %p965_p1, %p1225_p6 }
 0x362   : > { %1114 = dma.done.wait (!%p962_p2), %s883_s17, 768  }
 0x363   : > { %1116 = vsyncadd (!%p962_p2), %s883_s17, 4294966528  ;;  %p16_p3 = scmp.ge.s32.totalorder %s1208_s27, 4   ;;  %s1585_s21 = smov %s1123_s22 }
 0x364   : > { %s1586_s22 = smov %s1127_s23  ;;  %s1587_s23 = smov %s1219_s30 }
 0x365   : > { %s1588_s24 = smov %s1208_s27  ;;  %18 = sbr.rel (!%p16_p3) target bundleno = 3 (0x3), region = 79 }
 0x36c   :  { %888 = vsyncpa [#allocation4], 1 }
 0x36d   :  { %890 = vsyncpa [#allocation4 + $0x1], 1 }

</bundles_post_ra>
